<compile_context>
chip_gen: v7x
topology: tpu7x:2x2x1
jax: 0.10.0
libtpu: 0.0.40
codegen_flags: <defaults>
</compile_context>

<pallas_src>
import functools
import math

import jax
import jax.numpy as jnp
from jax.experimental import pallas as pl
from jax.experimental.pallas import tpu as pltpu

NUM_FEATURES = 5
LANE = 128
SUBLANE_I8 = 32          # native int8 sublane tile


def _round_up(x, m):
    return (x + m - 1) // m * m


def _tiling(batch, block_rows):
    """Choose (block_rows, padded_rows, num_blocks) for the packed (F, R, 128) layout."""
    rows = max(-(-batch // LANE), 1)
    rows = _round_up(rows, SUBLANE_I8)
    block_rows = _round_up(block_rows, SUBLANE_I8)
    if rows <= block_rows:
        if rows >= 2 * SUBLANE_I8:
            # Two balanced blocks so both v7x TensorCores get work.
            tb = _round_up(rows // 2, SUBLANE_I8)
        else:
            tb = rows
    else:
        tb = block_rows
    padded_rows = _round_up(rows, tb)
    return tb, padded_rows, padded_rows // tb


def coin_mrf_count_kernel(y_ref, s1_ref, s2_ref, *, chunk_rows):
    # y_ref: (F, TB, 128) int8 ; s1_ref / s2_ref: (1, F, 128) int32.
    f, block_rows, lanes = y_ref.shape
    num_chunks = block_rows // chunk_rows

    def body(c, carry):
        s1, s2 = carry
        r0 = pl.multiple_of(c * chunk_rows, chunk_rows)
        y = y_ref[:, pl.ds(r0, chunk_rows), :].astype(jnp.int32)   # (F, chunk, 128)
        s1 = s1 + jnp.sum(y, axis=1)        # per-feature, per-lane sum(y)
        s2 = s2 + jnp.sum(y * y, axis=1)    # per-feature, per-lane sum(y^2)
        return s1, s2

    zero = jnp.zeros((f, lanes), jnp.int32)
    s1, s2 = jax.lax.fori_loop(0, num_chunks, body, (zero, zero))
    s1_ref[...] = s1[None, :, :]
    s2_ref[...] = s2[None, :, :]


@functools.partial(jax.jit, static_argnames=("model_type", "block_rows", "chunk_rows"))
def coin_mrf_loss(Y, theta, psi, model_type="MNAR", block_rows=4096, chunk_rows=512):
    """Negative mean log-likelihood, identical to CoinMRF.forward(Y)."""
    B, F = Y.shape
    theta = theta.reshape(F).astype(jnp.float32)
    psi = psi.reshape(F).astype(jnp.float32)

    tb, padded_rows, num_blocks = _tiling(B, block_rows)
    chunk = math.gcd(tb, max(chunk_rows, SUBLANE_I8))   # divides tb, multiple of 32

    # One fused pass: cast -> feature-major -> zero-pad -> (F, R, 128) int8.
    yt = Y.astype(jnp.int8).T
    yt = jnp.pad(yt, ((0, 0), (0, padded_rows * LANE - B)))
    y_packed = yt.reshape(F, padded_rows, LANE)

    kernel = functools.partial(coin_mrf_count_kernel, chunk_rows=chunk)
    s1p, s2p = pl.pallas_call(
        kernel,
        out_shape=(
            jax.ShapeDtypeStruct((num_blocks, F, LANE), jnp.int32),
            jax.ShapeDtypeStruct((num_blocks, F, LANE), jnp.int32),
        ),
        grid=(num_blocks,),
        in_specs=[pl.BlockSpec((F, tb, LANE), lambda i: (0, i, 0))],
        out_specs=(
            pl.BlockSpec((1, F, LANE), lambda i: (i, 0, 0)),
            pl.BlockSpec((1, F, LANE), lambda i: (i, 0, 0)),
        ),
        compiler_params=pltpu.CompilerParams(
            dimension_semantics=("parallel",),       # megacore-shard the batch (v7x)
            vmem_limit_bytes=32 * 1024 * 1024,       # headroom; == v7x default scoped
        ),
    )(y_packed)

    # Tiny cross-block / cross-lane reduction + weighting in the wrapper.
    s1 = jnp.sum(s1p, axis=(0, 2)).astype(jnp.float32)   # sum(y)   per feature
    s2 = jnp.sum(s2p, axis=(0, 2)).astype(jnp.float32)   # sum(y^2) per feature
    n1 = 0.5 * (s2 + s1)          # #(y == 1)
    nm = 0.5 * (s2 - s1)          # #(y == -1)
    n0 = B - s2                   # #(y == 0)  (true batch size; padding is zeros)

    if model_type == "MNAR":
        a, b = theta + psi, jnp.zeros_like(theta)
    elif model_type == "MCAR":
        a, b = theta + psi, psi
    else:
        a, b = theta, jnp.zeros_like(theta)
    c = jax.nn.softplus(theta)    # stable logsumexp([0, theta]) for missing entries

    total = jnp.sum(a * n1 + b * n0 + c * nm)
    return -total / B


def coin_mrf_ref(Y, theta, psi, model_type="MNAR"):
    """Pure-JAX reference (vectorized transcription of the PyTorch loops)."""
    theta = theta.reshape(1, -1).astype(jnp.float32)
    psi = psi.reshape(1, -1).astype(jnp.float32)
    observed = Y != -1
    is_one = Y == 1
    if model_type == "MNAR":
        obs_lp = jnp.where(is_one, theta + psi, 0.0)
    elif model_type == "MCAR":
        obs_lp = jnp.where(is_one, theta + psi, psi)
    else:
        obs_lp = jnp.where(is_one, theta, 0.0)
    lp = jnp.where(observed, obs_lp, jax.nn.softplus(theta))
    return -jnp.mean(jnp.sum(lp, axis=-1))


if __name__ == "__main__":
    key = jax.random.PRNGKey(0)
    k_y, k_theta, k_psi, k_y2 = jax.random.split(key, 4)

    F = NUM_FEATURES
    # Module inits theta/psi to zeros; use deterministic nonzero values so every
    # path (including the missing/softplus branch) is exercised.
    theta = 0.5 * jax.random.normal(k_theta, (F,), dtype=jnp.float32)
    psi = 0.5 * jax.random.normal(k_psi, (F,), dtype=jnp.float32)

    # Small batch consistent with the module; Y entries in {-1 (missing), 0, 1}.
    B = 8
    Y = jax.random.randint(k_y, (B, F), -1, 2, dtype=jnp.int32)
    for mt in ("MNAR", "MCAR", "IGNORABLE"):
        loss = jax.block_until_ready(coin_mrf_loss(Y, theta, psi, model_type=mt))
        ref = coin_mrf_ref(Y, theta, psi, model_type=mt)
        assert jnp.allclose(loss, ref, atol=1e-5, rtol=1e-5), (mt, loss, ref)

    # Also exercise the multi-block (two-TensorCore) path and the zero-padded tail
    # (MCAR has b = psi != 0, so this checks that padding needs no correction).
    B2 = 8300
    Y2 = jax.random.randint(k_y2, (B2, F), -1, 2, dtype=jnp.int32)
    for mt in ("MNAR", "MCAR"):
        loss = jax.block_until_ready(coin_mrf_loss(Y2, theta, psi, model_type=mt))
        ref = coin_mrf_ref(Y2, theta, psi, model_type=mt)
        assert jnp.allclose(loss, ref, atol=1e-5, rtol=1e-5), (mt, loss, ref)

    print("KERNEL_OK")
</pallas_src>

<mosaic_0001>
module attributes {stable_mosaic.version = 11 : i64} {
  func.func @coin_mrf_count_kernel(%arg0: i32, %arg1: memref<5x32x128xi8, #tpu.memory_space<vmem>>, %arg2: memref<1x5x128xi32, #tpu.memory_space<vmem>>, %arg3: memref<1x5x128xi32, #tpu.memory_space<vmem>>) attributes {dimension_semantics = [#tpu.dimension_semantics<parallel>], iteration_bounds = array<i64: 1>, scalar_prefetch = 0 : i64, scratch_operands = 0 : i64, tpu.core_type = #tpu.core_type<tc>, window_params = [{transform_indices = @transform_0, window_bounds = array<i64: 5, 32, 128>}, {transform_indices = @transform_1, window_bounds = array<i64: 1, 5, 128>}, {transform_indices = @transform_2, window_bounds = array<i64: 1, 5, 128>}]} {
    %c0_i32 = arith.constant 0 : i32
    %0 = vector.broadcast %c0_i32 : i32 to vector<5x128xi32>
    %c0_i32_0 = arith.constant 0 : i32
    %c32_i32 = arith.constant 32 : i32
    %1 = arith.muli %c0_i32_0, %c32_i32 : i32
    %2 = tpu.assume_multiple %1, 32 : i32
    %c0 = arith.constant 0 : index
    %3 = arith.index_cast %2 : i32 to index
    %c0_1 = arith.constant 0 : index
    %4 = vector.load %arg1[%c0, %3, %c0_1] : memref<5x32x128xi8, #tpu.memory_space<vmem>>, vector<5x32x128xi8>
    %5 = arith.extsi %4 : vector<5x32x128xi8> to vector<5x32x128xi32>
    %cst = arith.constant dense<0> : vector<5x128xi32>
    %6 = vector.multi_reduction <add>, %5, %cst [1] : vector<5x32x128xi32> to vector<5x128xi32>
    %7 = arith.addi %0, %6 : vector<5x128xi32>
    %8 = arith.muli %5, %5 : vector<5x32x128xi32>
    %cst_2 = arith.constant dense<0> : vector<5x128xi32>
    %9 = vector.multi_reduction <add>, %8, %cst_2 [1] : vector<5x32x128xi32> to vector<5x128xi32>
    %10 = arith.addi %0, %9 : vector<5x128xi32>
    %c1_i32 = arith.constant 1 : i32
    %11 = vector.shape_cast %7 : vector<5x128xi32> to vector<1x5x128xi32>
    %c0_3 = arith.constant 0 : index
    %c0_4 = arith.constant 0 : index
    %c0_5 = arith.constant 0 : index
    %12 = vector.load %arg2[%c0_3, %c0_4, %c0_5] : memref<1x5x128xi32, #tpu.memory_space<vmem>>, vector<1x5x128xi32>
    tpu.vector_store %arg2[%c0_3, %c0_4, %c0_5], %11 {strides = array<i32>} : memref<1x5x128xi32, #tpu.memory_space<vmem>>, vector<1x5x128xi32>,
    %13 = vector.shape_cast %10 : vector<5x128xi32> to vector<1x5x128xi32>
    %c0_6 = arith.constant 0 : index
    %c0_7 = arith.constant 0 : index
    %c0_8 = arith.constant 0 : index
    %14 = vector.load %arg3[%c0_6, %c0_7, %c0_8] : memref<1x5x128xi32, #tpu.memory_space<vmem>>, vector<1x5x128xi32>
    tpu.vector_store %arg3[%c0_6, %c0_7, %c0_8], %13 {strides = array<i32>} : memref<1x5x128xi32, #tpu.memory_space<vmem>>, vector<1x5x128xi32>,
    return
  }
  func.func @transform_0(%arg0: i32) -> (i32, i32, i32) {
    %c0_i32 = arith.constant 0 : i32
    %c0_i32_0 = arith.constant 0 : i32
    %c0_i32_1 = arith.constant 0 : i32
    return %c0_i32, %arg0, %c0_i32_0 : i32, i32, i32
  }
  func.func @transform_1(%arg0: i32) -> (i32, i32, i32) {
    %c0_i32 = arith.constant 0 : i32
    %c0_i32_0 = arith.constant 0 : i32
    %c0_i32_1 = arith.constant 0 : i32
    return %arg0, %c0_i32, %c0_i32_0 : i32, i32, i32
  }
  func.func @transform_2(%arg0: i32) -> (i32, i32, i32) {
    %c0_i32 = arith.constant 0 : i32
    %c0_i32_0 = arith.constant 0 : i32
    %c0_i32_1 = arith.constant 0 : i32
    return %arg0, %c0_i32, %c0_i32_0 : i32, i32, i32
  }
}

</mosaic_0001>

<bundles_post_ra>
// kernel: coin_mrf_loss.1
= control target key start
LH: loop header
LB: loop body
LE: loop exit
PB: predicated region body
PF: predicated region fallthrough
CT: control target
= control target key end

     0   :  { %vm145_vm0 = vcmask 1041409   ;;  %vm147_vm1 = vcmask 1042434   ;;  %vm149_vm2 = vcmask 1043459   ;;  %vm151_vm3 = vcmask 1044484   ;;  %s291_s0 = inlined_call_operand.vmem [shape: s8[5,32,128], index: 0, kind: input, shape index: {}]   ;;  %s292_s1 = inlined_call_operand.vmem [shape: s32[1,5,128], index: 1, kind: output, shape index: {0}]   ;;  %s293_s2 = inlined_call_operand.vmem [shape: s32[1,5,128], index: 2, kind: output, shape index: {1}]  }
   0x1   :  { %v10_v0 = vld [vmem:[%s291_s0] sm:$0xff]  ;;  %v11_v1 = vld [vmem:[%s291_s0 + $0x8] sm:$0xff]  ;;  %v12_v2 = vld [vmem:[%s291_s0 + $0x10] sm:$0xff] }
   0x2   :  { %v13_v3 = vld [vmem:[%s291_s0 + $0x18] sm:$0xff]  ;;  %v15_v4 = vunpack.c.0.s8 %v10_v0  ;;  %v16_v5 = vunpack.c.1.s8 %v10_v0  ;;  %v17_v6 = vunpack.c.2.s8 %v10_v0  ;;  %v14_v7 = vld [vmem:[%s291_s0 + $0x20] sm:$0xff]  ;;  %v18_v8 = vunpack.c.3.s8 %v10_v0 }
   0x3   :  { %v197_v9 = vunpack.c.0.s8 %v11_v1  ;;  %v199_v10 = vunpack.c.1.s8 %v11_v1  ;;  %v201_v11 = vunpack.c.2.s8 %v11_v1  ;;  %v203_v12 = vunpack.c.3.s8 %v11_v1 }
   0x4   :  { %v205_v13 = vunpack.c.0.s8 %v12_v2  ;;  %v207_v14 = vunpack.c.1.s8 %v12_v2  ;;  %v209_v15 = vunpack.c.2.s8 %v12_v2  ;;  %v211_v16 = vunpack.c.3.s8 %v12_v2 }
   0x5   :  { %v213_v17 = vunpack.c.0.s8 %v13_v3  ;;  %v215_v18 = vunpack.c.1.s8 %v13_v3  ;;  %v217_v19 = vunpack.c.2.s8 %v13_v3  ;;  %v219_v20 = vunpack.c.3.s8 %v13_v3 }
   0x6   :  { %v221_v21 = vunpack.c.0.s8 %v14_v7  ;;  %v223_v22 = vunpack.c.1.s8 %v14_v7  ;;  %v225_v23 = vunpack.c.2.s8 %v14_v7  ;;  %v35_v24 = vadd.s32 %v16_v5, %v15_v4 }
   0x7   :  { %v44_v25 = vadd.s32 %v199_v10, %v197_v9  ;;  %v53_v26 = vadd.s32 %v207_v14, %v205_v13  ;;  %v62_v27 = vadd.s32 %v215_v18, %v213_v17  ;;  %v233_v28 = vunpack.c.3.s8 %v14_v7 }
   0x8   :  { %v71_v29 = vadd.s32 %v223_v22, %v221_v21  ;;  %v80_v30 = vmul.u32 %v15_v4, %v15_v4  ;;  %v81_v31 = vmul.u32 %v16_v5, %v16_v5  ;;  %v36_v32 = vadd.s32 %v35_v24, %v17_v6 }
   0x9   :  { %v45_v33 = vadd.s32 %v44_v25, %v201_v11  ;;  %v54_v34 = vadd.s32 %v53_v26, %v209_v15  ;;  %v63_v35 = vadd.s32 %v62_v27, %v217_v19  ;;  %v82_v37 = vmul.u32 %v17_v6, %v17_v6 }
   0xa   :  { %v72_v36 = vadd.s32 %v71_v29, %v225_v23  ;;  %v83_v38 = vmul.u32 %v18_v8, %v18_v8  ;;  %v100_v39 = vadd.s32 %v81_v31, %v80_v30  ;;  %v37_v40 = vadd.s32 %v36_v32, %v18_v8 }
   0xb   :  { %v46_v41 = vadd.s32 %v45_v33, %v203_v12  ;;  %v55_v42 = vadd.s32 %v54_v34, %v211_v16  ;;  %v64_v43 = vadd.s32 %v63_v35, %v219_v20  ;;  %v84_v45 = vmul.u32 %v197_v9, %v197_v9 }
   0xc   :  { %v73_v44 = vadd.s32 %v72_v36, %v233_v28  ;;  %v101_v46 = vadd.s32 %v100_v39, %v82_v37  ;;  %v38_v47 = vrot.slane %v37_v40, 4  ;;  %v85_v52 = vmul.u32 %v199_v10, %v199_v10 }
   0xd   :  { %v47_v48 = vrot.slane %v46_v41, 4  ;;  %v56_v49 = vrot.slane %v55_v42, 4  ;;  %v65_v50 = vrot.slane %v64_v43, 4  ;;  %v86_v53 = vmul.u32 %v201_v11, %v201_v11 }
   0xe   :  { %v74_v51 = vrot.slane %v73_v44, 4  ;;  %v102_v54 = vadd.s32 %v101_v46, %v83_v38  ;;  %v39_v55 = vadd.s32 %v38_v47, %v37_v40  ;;  %v87_v60 = vmul.u32 %v203_v12, %v203_v12 }
   0xf   :  { %v48_v56 = vadd.s32 %v47_v48, %v46_v41  ;;  %v57_v57 = vadd.s32 %v56_v49, %v55_v42  ;;  %v66_v58 = vadd.s32 %v65_v50, %v64_v43  ;;  %v88_v61 = vmul.u32 %v205_v13, %v205_v13 }
  0x10   :  { %v75_v59 = vadd.s32 %v74_v51, %v73_v44  ;;  %v40_v62 = vrot.slane %v39_v55, 2  ;;  %v89_v3 = vmul.u32 %v207_v14, %v207_v14  ;;  %v90_v4 = vmul.u32 %v209_v15, %v209_v15 }
  0x11   :  { %v49_v63 = vrot.slane %v48_v56, 2  ;;  %v58_v0 = vrot.slane %v57_v57, 2  ;;  %v67_v1 = vrot.slane %v66_v58, 2  ;;  %v103_v5 = vrot.slane %v102_v54, 4 }
  0x12   :  { %v76_v2 = vrot.slane %v75_v59, 2  ;;  %v41_v6 = vadd.s32 %v40_v62, %v39_v55  ;;  %v91_v11 = vmul.u32 %v211_v16, %v211_v16  ;;  %v92_v12 = vmul.u32 %v213_v17, %v213_v17 }
  0x13   :  { %v50_v7 = vadd.s32 %v49_v63, %v48_v56  ;;  %v59_v8 = vadd.s32 %v58_v0, %v57_v57  ;;  %v68_v9 = vadd.s32 %v67_v1, %v66_v58  ;;  %v93_v15 = vmul.u32 %v215_v18, %v215_v18 }
  0x14   :  { %v77_v10 = vadd.s32 %v76_v2, %v75_v59  ;;  %v42_v13 = vrot.slane %v41_v6, 1  ;;  %v94_v27 = vmul.u32 %v217_v19, %v217_v19  ;;  %v104_v29 = vadd.s32 %v103_v5, %v102_v54 }
  0x15   :  { %v51_v24 = vrot.slane %v50_v7, 1  ;;  %v60_v25 = vrot.slane %v59_v8, 1  ;;  %v69_v14 = vrot.slane %v68_v9, 1  ;;  %v95_v16 = vmul.u32 %v219_v20, %v219_v20 }
  0x16   :  { %v78_v26 = vrot.slane %v77_v10, 1  ;;  %v43_v30 = vadd.s32 %v42_v13, %v41_v6  ;;  %v96_v33 = vmul.u32 %v221_v21, %v221_v21  ;;  %v97_v34 = vmul.u32 %v223_v22, %v223_v22 }
  0x17   :  { %v52_v31 = vadd.s32 %v51_v24, %v50_v7  ;;  %v61_v32 = vadd.s32 %v60_v25, %v59_v8  ;;  %v70_v17 = vadd.s32 %v69_v14, %v68_v9  ;;  %v98_v18 = vmul.u32 %v225_v23, %v225_v23 }
  0x18   :  { %v79_v35 = vadd.s32 %v78_v26, %v77_v10  ;;  %v109_v19 = vadd.s32 %v85_v52, %v84_v45  ;;  %v118_v36 = vadd.s32 %v89_v3, %v88_v61  ;;  %v99_v37 = vmul.u32 %v233_v28, %v233_v28 }
  0x19   :  { %v127_v38 = vadd.s32 %v93_v15, %v92_v12  ;;  %v136_v39 = vadd.s32 %v97_v34, %v96_v33  ;;  %v146_v20 = vsel %vm145_vm0, %v52_v31, %v43_v30  ;;  %v105_v40 = vrot.slane %v104_v29, 2 }
  0x1a   :  { %v110_v41 = vadd.s32 %v109_v19, %v86_v53  ;;  %v119_v21 = vadd.s32 %v118_v36, %v90_v4  ;;  %v148_v42 = vsel %vm147_vm1, %v61_v32, %v146_v20 }
  0x1b   :  { %v128_v22 = vadd.s32 %v127_v38, %v94_v27  ;;  %v137_v43 = vadd.s32 %v136_v39, %v98_v18  ;;  %v150_v44 = vsel %vm149_vm2, %v70_v17, %v148_v42  ;;  %v106_v28 = vadd.s32 %v105_v40, %v104_v29 }
  0x1c   :  { %v111_v46 = vadd.s32 %v110_v41, %v87_v60  ;;  %v120_v23 = vadd.s32 %v119_v21, %v91_v11  ;;  %v152_v45 = vsel %vm151_vm3, %v79_v35, %v150_v44 }
  0x1d   :  { %v129_v47 = vadd.s32 %v128_v22, %v95_v16  ;;  %v138_v48 = vadd.s32 %v137_v43, %v99_v37  ;;  %153 = vst [vmem:[%s292_s1] sm:$0x1f] %v152_v45  ;;  %v107_v57 = vrot.slane %v106_v28, 1 }
  0x1e   :  { %v112_v49 = vrot.slane %v111_v46, 4  ;;  %v121_v50 = vrot.slane %v120_v23, 4 }
  0x1f   :  { %v130_v51 = vrot.slane %v129_v47, 4  ;;  %v139_v52 = vrot.slane %v138_v48, 4  ;;  %v108_v2 = vadd.s32 %v107_v57, %v106_v28 }
  0x20   :  { %v113_v53 = vadd.s32 %v112_v49, %v111_v46  ;;  %v122_v54 = vadd.s32 %v121_v50, %v120_v23 }
  0x21   :  { %v131_v55 = vadd.s32 %v130_v51, %v129_v47  ;;  %v140_v56 = vadd.s32 %v139_v52, %v138_v48 }
  0x22   :  { %v114_v58 = vrot.slane %v113_v53, 2  ;;  %v123_v59 = vrot.slane %v122_v54, 2 }
  0x23   :  { %v132_v60 = vrot.slane %v131_v55, 2  ;;  %v141_v61 = vrot.slane %v140_v56, 2 }
  0x24   :  { %v115_v62 = vadd.s32 %v114_v58, %v113_v53  ;;  %v124_v63 = vadd.s32 %v123_v59, %v122_v54 }
  0x25   :  { %v133_v0 = vadd.s32 %v132_v60, %v131_v55  ;;  %v142_v1 = vadd.s32 %v141_v61, %v140_v56 }
  0x26   :  { %v116_v3 = vrot.slane %v115_v62, 1  ;;  %v125_v4 = vrot.slane %v124_v63, 1 }
  0x27   :  { %v134_v5 = vrot.slane %v133_v0, 1  ;;  %v143_v6 = vrot.slane %v142_v1, 1 }
  0x28   :  { %v117_v7 = vadd.s32 %v116_v3, %v115_v62  ;;  %v126_v8 = vadd.s32 %v125_v4, %v124_v63 }
  0x29   :  { %v135_v9 = vadd.s32 %v134_v5, %v133_v0  ;;  %v144_v10 = vadd.s32 %v143_v6, %v142_v1 }
  0x2a   :  { %v154_v11 = vsel %vm145_vm0, %v117_v7, %v108_v2 }
  0x2b   :  { %v155_v12 = vsel %vm147_vm1, %v126_v8, %v154_v11 }
  0x2c   :  { %v156_v13 = vsel %vm149_vm2, %v135_v9, %v155_v12 }
  0x2d   :  { %v157_v24 = vsel %vm151_vm3, %v144_v10, %v156_v13 }
  0x2e   :  { %158 = vst [vmem:[%s293_s2] sm:$0x1f] %v157_v24 }

</bundles_post_ra>
